<compile_context>
chip_gen: v7x
topology: tpu7x:2x2x1
jax: 0.10.0
libtpu: 0.0.40
codegen_flags: <defaults>
</compile_context>

<pallas_src>
import jax
import jax.numpy as jnp
from jax.experimental import pallas as pl
from jax.experimental.pallas import tpu as pltpu


def se_block_kernel(x_ref, w1_ref, w2_ref, o_ref):
    # x_ref / o_ref: (Bt, C, HW) f32 tile.
    # w1_ref: (C, Cr)  -- first excitation weight, pre-scaled by 1/HW.
    # w2_ref: (Cr, C)
    # --- squeeze: spatial sum (the 1/HW of the mean is folded into w1) ---
    pooled = jnp.sum(x_ref[...], axis=-1)                          # (Bt, C)
    # --- excitation: Linear -> ReLU -> Linear -> Sigmoid ---
    h = jnp.dot(pooled, w1_ref[...], preferred_element_type=jnp.float32)
    h = jnp.maximum(h, 0.0)                                        # (Bt, Cr)
    z = jnp.dot(h, w2_ref[...], preferred_element_type=jnp.float32)
    s = 1.0 / (1.0 + jnp.exp(-z))                                  # (Bt, C)
    # --- scale: re-read the tile from VMEM (don't hold it live in vregs) ---
    o_ref[...] = x_ref[...] * s[:, :, None]


def _tpu_vmem_and_cores():
    """(physical VMEM bytes per TensorCore, TensorCores per chip), conservative."""
    kind = ""
    try:
        kind = jax.devices()[0].device_kind.lower()
    except Exception:
        pass
    is_v7 = "7" in kind                      # v7x: 2 TCs, 64 MiB VMEM per TC
    vmem = None
    try:
        vmem = int(getattr(pltpu.get_tpu_info(), "vmem_capacity_bytes", 0)) or None
    except Exception:
        vmem = None
    if vmem is None:
        vmem = (64 if is_v7 else 128) * 1024 * 1024
    return vmem, (2 if is_v7 else 1)


def _choose_tiling(B, C, HW, vmem_bytes, num_tc):
    """Pick batch tile Bt (fit-based, not divisor-based) and vmem_limit_bytes."""
    if vmem_bytes >= 96 * 1024 * 1024:       # v5e / v6e (128 MiB physical)
        budget = 64 * 1024 * 1024
        vmem_limit = 96 * 1024 * 1024
    else:                                     # v7x (64 MiB physical)
        budget = 40 * 1024 * 1024
        vmem_limit = 48 * 1024 * 1024

    bytes_per_img = C * HW * 4
    max_bt = max(1, budget // (4 * bytes_per_img))     # 2 in-bufs + 2 out-bufs
    bt = max(1, min(B, max_bt))
    if num_tc >= 2 and B >= 2:
        # Keep >= 2 grid steps so the batch-tile axis can split across TCs.
        bt = max(1, min(bt, (B + 1) // 2))

    # If even a single image does not fit the budget, raise the scoped limit so
    # Bt=1 can still compile (capped at physical VMEM).
    # TODO(synk): a two-pass (gate pass + tiled scale pass) kernel would be the
    # proper fix for images whose (C, HW) slab exceeds VMEM; not needed at
    # realistic SE-block sizes.
    needed = 4 * bytes_per_img * bt + (1 << 20)
    vmem_limit = min(max(vmem_limit, needed), vmem_bytes)
    return bt, vmem_limit


def se_block(x_nchw, w1, w2):
    """SEBlock forward.  x: (B, C, H, W).  w1: (C//r, C), w2: (C, C//r) in
    PyTorch nn.Linear (out_features, in_features) layout, no bias."""
    B, C, H, W = x_nchw.shape
    HW = H * W
    Cr = w1.shape[0]

    # (B, C, HW): HW on lanes.  The block's last dim equals the full HW, so no
    # padding / slicing passes are needed (full-dim block is 128-rule exempt).
    x3 = x_nchw.reshape(B, C, HW).astype(jnp.float32)

    # Fold the 1/HW of the average pool into the first linear layer (only here,
    # not again inside the kernel).
    w1t = (w1.T * (1.0 / HW)).astype(jnp.float32)   # (C, Cr)
    w2t = w2.T.astype(jnp.float32)                  # (Cr, C)

    vmem_bytes, num_tc = _tpu_vmem_and_cores()
    Bt, vmem_limit = _choose_tiling(B, C, HW, vmem_bytes, num_tc)
    steps = pl.cdiv(B, Bt)

    cost = pl.CostEstimate(
        flops=2 * B * C * Cr * 2 + B * C * HW,      # two tiny matmuls + scale
        transcendentals=B * C,                      # sigmoid exp
        bytes_accessed=2 * B * C * HW * 4 + 2 * C * Cr * 4,
    )

    def call(dim_sem):
        return pl.pallas_call(
            se_block_kernel,
            out_shape=jax.ShapeDtypeStruct((B, C, HW), jnp.float32),
            grid=(steps,),
            in_specs=[
                pl.BlockSpec((Bt, C, HW), lambda b: (b, 0, 0)),
                pl.BlockSpec((C, Cr), lambda b: (0, 0)),
                pl.BlockSpec((Cr, C), lambda b: (0, 0)),
            ],
            out_specs=pl.BlockSpec((Bt, C, HW), lambda b: (b, 0, 0)),
            compiler_params=pltpu.CompilerParams(
                dimension_semantics=dim_sem,
                vmem_limit_bytes=vmem_limit,
            ),
            cost_estimate=cost,
        )(x3, w1t, w2t)

    if num_tc >= 2 and steps >= 2:
        # Real dual-TensorCore sharding of the batch-tile loop on v7x.
        try:
            out3 = call((pltpu.CORE_PARALLEL,))
        except Exception:
            out3 = call(("parallel",))
    else:
        out3 = call(("parallel",))

    return out3.reshape(B, C, H, W).astype(x_nchw.dtype)


def se_block_ref(x_nchw, w1, w2):
    """Pure-JAX reference mirroring the PyTorch forward exactly."""
    pooled = jnp.mean(x_nchw, axis=(2, 3))              # (B, C)
    h = jnp.maximum(pooled @ w1.T, 0.0)                 # (B, C//r)
    s = jax.nn.sigmoid(h @ w2.T)                        # (B, C)
    return x_nchw * s[:, :, None, None]


if __name__ == "__main__":
    # Small shapes consistent with the module: channels must be >= reduction.
    B, C, H, W = 2, 32, 16, 16
    reduction = 16
    Cr = C // reduction

    key = jax.random.PRNGKey(0)
    kx, kw1, kw2 = jax.random.split(key, 3)

    x = jax.random.normal(kx, (B, C, H, W), dtype=jnp.float32)
    # Deterministic synthetic weights, PyTorch nn.Linear layout (out, in), no bias.
    w1 = jax.random.normal(kw1, (Cr, C), dtype=jnp.float32) * 0.1
    w2 = jax.random.normal(kw2, (C, Cr), dtype=jnp.float32) * 0.1

    out = jax.block_until_ready(se_block(x, w1, w2))
    ref = se_block_ref(x, w1, w2)

    assert out.shape == (B, C, H, W)
    assert jnp.allclose(out, ref, atol=1e-5, rtol=1e-5), "mismatch vs reference"

    print("KERNEL_OK")
</pallas_src>

<mosaic_0001>
module attributes {stable_mosaic.version = 11 : i64} {
  func.func @se_block_kernel(%arg0: i32, %arg1: memref<2x32x256xf32, #tpu.memory_space<vmem>>, %arg2: memref<32x2xf32, #tpu.memory_space<vmem>>, %arg3: memref<2x32xf32, #tpu.memory_space<vmem>>, %arg4: memref<2x32x256xf32, #tpu.memory_space<vmem>>) attributes {dimension_semantics = [#tpu.dimension_semantics<parallel>], iteration_bounds = array<i64: 1>, scalar_prefetch = 0 : i64, scratch_operands = 0 : i64, tpu.core_type = #tpu.core_type<tc>, window_params = [{transform_indices = @transform_0, window_bounds = array<i64: 2, 32, 256>}, {pipeline_mode = #tpu.pipeline_mode<synchronous>, transform_indices = @transform_1, window_bounds = array<i64: 32, 2>}, {pipeline_mode = #tpu.pipeline_mode<synchronous>, transform_indices = @transform_2, window_bounds = array<i64: 2, 32>}, {transform_indices = @transform_3, window_bounds = array<i64: 2, 32, 256>}]} {
    %c0 = arith.constant 0 : index
    %c0_0 = arith.constant 0 : index
    %c0_1 = arith.constant 0 : index
    %0 = vector.load %arg1[%c0, %c0_0, %c0_1] : memref<2x32x256xf32, #tpu.memory_space<vmem>>, vector<2x32x256xf32>
    %cst = arith.constant dense<0.000000e+00> : vector<2x32xf32>
    %1 = vector.multi_reduction <add>, %0, %cst [2] : vector<2x32x256xf32> to vector<2x32xf32>
    %c0_2 = arith.constant 0 : index
    %c0_3 = arith.constant 0 : index
    %2 = vector.load %arg2[%c0_2, %c0_3] : memref<32x2xf32, #tpu.memory_space<vmem>>, vector<32x2xf32>
    %cst_4 = arith.constant dense<0.000000e+00> : vector<2x2xf32>
    %3 = tpu.matmul %1, %2, %cst_4 {dimension_numbers = #tpu.dot_dimension_numbers<[1], [0], [0], [1], [0, 0, 1, 1], [], []>} : vector<2x32xf32>, vector<32x2xf32>, vector<2x2xf32> -> vector<2x2xf32>
    %cst_5 = arith.constant 0.000000e+00 : f32
    %4 = vector.broadcast %cst_5 : f32 to vector<2x2xf32>
    %5 = arith.maximumf %3, %4 : vector<2x2xf32>
    %c0_6 = arith.constant 0 : index
    %c0_7 = arith.constant 0 : index
    %6 = vector.load %arg3[%c0_6, %c0_7] : memref<2x32xf32, #tpu.memory_space<vmem>>, vector<2x32xf32>
    %cst_8 = arith.constant dense<0.000000e+00> : vector<2x32xf32>
    %7 = tpu.matmul %5, %6, %cst_8 {dimension_numbers = #tpu.dot_dimension_numbers<[1], [0], [0], [1], [0, 0, 1, 1], [], []>} : vector<2x2xf32>, vector<2x32xf32>, vector<2x32xf32> -> vector<2x32xf32>
    %cst_9 = arith.constant 0.000000e+00 : f32
    %8 = vector.broadcast %cst_9 : f32 to vector<2x32xf32>
    %9 = arith.subf %8, %7 : vector<2x32xf32>
    %10 = math.exp %9 : vector<2x32xf32>
    %cst_10 = arith.constant 1.000000e+00 : f32
    %11 = vector.broadcast %cst_10 : f32 to vector<2x32xf32>
    %12 = arith.addf %11, %10 : vector<2x32xf32>
    %cst_11 = arith.constant 1.000000e+00 : f32
    %13 = vector.broadcast %cst_11 : f32 to vector<2x32xf32>
    %14 = arith.divf %13, %12 : vector<2x32xf32>
    %c0_12 = arith.constant 0 : index
    %c0_13 = arith.constant 0 : index
    %c0_14 = arith.constant 0 : index
    %15 = vector.load %arg1[%c0_12, %c0_13, %c0_14] : memref<2x32x256xf32, #tpu.memory_space<vmem>>, vector<2x32x256xf32>
    %16 = vector.shape_cast %14 : vector<2x32xf32> to vector<2x32x1xf32>
    %17 = vector.broadcast %16 : vector<2x32x1xf32> to vector<2x32x256xf32>
    %18 = arith.mulf %15, %17 : vector<2x32x256xf32>
    %c0_15 = arith.constant 0 : index
    %c0_16 = arith.constant 0 : index
    %c0_17 = arith.constant 0 : index
    %19 = vector.load %arg4[%c0_15, %c0_16, %c0_17] : memref<2x32x256xf32, #tpu.memory_space<vmem>>, vector<2x32x256xf32>
    tpu.vector_store %arg4[%c0_15, %c0_16, %c0_17], %18 {strides = array<i32>} : memref<2x32x256xf32, #tpu.memory_space<vmem>>, vector<2x32x256xf32>,
    return
  }
  func.func @transform_0(%arg0: i32) -> (i32, i32, i32) {
    %c0_i32 = arith.constant 0 : i32
    %c0_i32_0 = arith.constant 0 : i32
    %c0_i32_1 = arith.constant 0 : i32
    return %arg0, %c0_i32, %c0_i32_0 : i32, i32, i32
  }
  func.func @transform_1(%arg0: i32) -> (i32, i32) {
    %c0_i32 = arith.constant 0 : i32
    %c0_i32_0 = arith.constant 0 : i32
    %c0_i32_1 = arith.constant 0 : i32
    return %c0_i32, %c0_i32_0 : i32, i32
  }
  func.func @transform_2(%arg0: i32) -> (i32, i32) {
    %c0_i32 = arith.constant 0 : i32
    %c0_i32_0 = arith.constant 0 : i32
    %c0_i32_1 = arith.constant 0 : i32
    return %c0_i32, %c0_i32_0 : i32, i32
  }
  func.func @transform_3(%arg0: i32) -> (i32, i32, i32) {
    %c0_i32 = arith.constant 0 : i32
    %c0_i32_0 = arith.constant 0 : i32
    %c0_i32_1 = arith.constant 0 : i32
    return %arg0, %c0_i32, %c0_i32_0 : i32, i32, i32
  }
}

</mosaic_0001>

<bundles_post_ra>
// kernel: tpu_custom_call.1
= control target key start
LH: loop header
LB: loop body
LE: loop exit
PB: predicated region body
PF: predicated region fallthrough
CT: control target
= control target key end

     0   :  { %8 = vsyncpa [#allocation3], 0  ;;  %s691_s0 = inlined_call_operand.hbm [shape: f32[2,32,256], index: 0, kind: input, shape index: {}]   ;;  %s692_s1 = inlined_call_operand.hbm [shape: f32[32,2], index: 1, kind: input, shape index: {}]   ;;  %s693_s2 = inlined_call_operand.hbm [shape: f32[2,32], index: 2, kind: input, shape index: {}]   ;;  %s694_s3 = inlined_call_operand.hbm [shape: f32[2,32,256], index: 3, kind: output, shape index: {}]  }
   0x1   :  { %9 = vsyncpa [#allocation6], 0 }
   0x2   :  { %10 = vsyncpa [#allocation4], 0  ;;  %s542_s12 = smov [#allocation5]   ;;  %s448_s16 = scalar_lea.hbm %s692_s1, 512 }
   0x3   :  { %s28_s13 = sshll.u32 %s542_s12, 4  ;;  %p449_p0 = scmp.ne.s32.totalorder %s692_s1, %s448_s16  ;;  %s29_s13 = int_to_ptr.vmem [resolvable:$true] %s28_s13 }
   0x4   :  { %p452_p1 = scmp.lt.u32.totalorder %s448_s16, %s692_s1 }
   0x6   :  { %p454_p2 = pnand %p452_p1, %p449_p0 }
   0x8   :  { %457 = shalt.err (!%p454_p2)
}
   0x9   :  { %s458_s21 = scalar_lea.vmem %s29_s13, 512  ;;  %p463_p4 = scmp.lt.s32.totalorder %s29_s13, %s29_s13 }
   0xa   :  { %p459_p3 = scmp.ne.s32.totalorder %s29_s13, %s458_s21  ;;  %p464_p5 = scmp.lt.s32.totalorder %s458_s21, %s458_s21 }
   0xc   :  { %p465_p6 = por %p464_p5, %p463_p4 }
   0xe   :  { %p466_p7 = pnand %p465_p6, %p459_p3 }
  0x10   :  { %469 = shalt.err (!%p466_p7)
}
  0x11   :  { %s543_s22 = smov 128   ;;  %s544_s23 = smov 8  }
  0x12   :  { %34 = dma.hbm_to_vmem [thread:$0]  %s692_s1, 512, %s29_s13, [#allocation6], %s543_s22, %s543_s22, %s544_s23  }
  0x13   :  { %s545_s26 = smov [#allocation2]   ;;  %s470_s30 = scalar_lea.hbm %s691_s0, 2048 }
  0x14   :  { %s16_s27 = sshll.u32 %s545_s26, 4  ;;  %p471_p8 = scmp.ne.s32.totalorder %s691_s0, %s470_s30  ;;  %s17_s27 = int_to_ptr.vmem [resolvable:$true] %s16_s27 }
  0x15   :  { %p474_p9 = scmp.lt.u32.totalorder %s470_s30, %s691_s0 }
  0x17   :  { %p476_p10 = pnand %p474_p9, %p471_p8 }
  0x19   :  { %479 = shalt.err (!%p476_p10)
}
  0x1a   :  { %s480_s8 = scalar_lea.vmem %s17_s27, 2048  ;;  %p485_p12 = scmp.lt.s32.totalorder %s17_s27, %s17_s27 }
  0x1b   :  { %p481_p11 = scmp.ne.s32.totalorder %s17_s27, %s480_s8  ;;  %p486_p13 = scmp.lt.s32.totalorder %s480_s8, %s480_s8 }
  0x1d   :  { %p487_p0 = por %p486_p13, %p485_p12 }
  0x1f   :  { %p488_p1 = pnand %p487_p0, %p481_p11 }
  0x21   :  { %491 = shalt.err (!%p488_p1)
}
  0x22   :  { %s546_s1 = smov 256   ;;  %s547_s9 = smov 16  }
  0x23   :  { %22 = dma.hbm_to_vmem [thread:$0]  %s691_s0, 2048, %s17_s27, [#allocation3], %s546_s1, %s546_s1, %s547_s9  }
  0x24   :  { %s548_s12 = smov [#allocation7]   ;;  %s492_s16 = scalar_lea.hbm %s693_s2, 32 }
  0x25   :  { %s41_s13 = sshll.u32 %s548_s12, 4  ;;  %p493_p2 = scmp.ne.s32.totalorder %s693_s2, %s492_s16  ;;  %s42_s13 = int_to_ptr.vmem [resolvable:$true] %s41_s13 }
  0x26   :  { %p496_p3 = scmp.lt.u32.totalorder %s492_s16, %s693_s2 }
  0x28   :  { %p498_p4 = pnand %p496_p3, %p493_p2 }
  0x2a   :  { %501 = shalt.err (!%p498_p4)
}
  0x2b   :  { %s502_s21 = scalar_lea.vmem %s42_s13, 32  ;;  %p507_p6 = scmp.lt.s32.totalorder %s42_s13, %s42_s13 }
  0x2c   :  { %p503_p5 = scmp.ne.s32.totalorder %s42_s13, %s502_s21  ;;  %p508_p7 = scmp.lt.s32.totalorder %s502_s21, %s502_s21 }
  0x2e   :  { %p509_p8 = por %p508_p7, %p507_p6 }
  0x30   :  { %p510_p9 = pnand %p509_p8, %p503_p5 }
  0x32   :  { %513 = shalt.err (!%p510_p9)
}
  0x33   :  { %44 = dma.hbm_to_vmem [thread:$0]  %s693_s2, 32, %s42_s13, [#allocation6]  }
  0x34   :  { %536 = dma.done.wait [#allocation3], 2048  }
  0x35   :  { %537 = vsyncadd [#allocation3], 4294965248 }
  0x36   :  { %538 = dma.done.wait [#allocation6], 544  }
  0x37   :  { %539 = vsyncadd [#allocation6], 4294966752  ;;  %v612_v0 = vld [vmem:[#allocation2 + $0x40] sm:$0xff]  ;;  %v614_v1 = vld [vmem:[#allocation2 + $0x48] sm:$0xff]  ;;  %v549_v27 = vmov 0.0|0.0   ;;  %vm550_vm0 = vmmov 0   ;;  %v106_v32 = vlaneseq }
  0x38   :  { %v616_v2 = vld [vmem:[#allocation2] sm:$0xff]  ;;  %v82_v3 = vadd.f32 %v614_v1, %v612_v0  ;;  %v620_v4 = vld [vmem:[#allocation2 + $0x8] sm:$0xff]  ;;  %v622_v5 = vld [vmem:[#allocation2 + $0x50] sm:$0xff]  ;;  %427 = vmatprep.subr.bf16.mxu0 %v549_v27  ;;  %v551_v31 = vmov 0.0   ;;  %vm117_vm1 = vcmask 130112   ;;  %vm124_vm2 = vcmask 195712  }
  0x39   :  { %v624_v6 = vld [vmem:[#allocation2 + $0x58] sm:$0xff]  ;;  %v70_v7 = vadd.f32 %v620_v4, %v616_v2  ;;  %v628_v8 = vld [vmem:[#allocation2 + $0x10] sm:$0xff]  ;;  %v636_v12 = vld [vmem:[#allocation2 + $0x60] sm:$0xff]  ;;  %419 = vmatprep.mubr.msk.f32.mxu0 %vm550_vm0, %v551_v31  ;;  %422 = vmatprep.subr.mxu1 %v551_v31  ;;  %v107_v33 = vand.u32 127, %v106_v32  ;;  %v109_v38 = vshrl.u32 %v106_v32, 7  ;;  %vm131_vm3 = vcmask 261312  }
  0x3a   :  { %v630_v9 = vld [vmem:[#allocation2 + $0x18] sm:$0xff]  ;;  %83 = vadd.xlane.f32.xlu1 %v82_v3  ;;  %v85_v10 = vadd.f32 %v624_v6, %v622_v5  ;;  %v638_v13 = vld [vmem:[#allocation2 + $0x68] sm:$0xff]  ;;  %v640_v14 = vld [vmem:[#allocation2 + $0x20] sm:$0xff]  ;;  %424 = vmatprep.mubr.msk.f32.mxu1 %vm550_vm0, %v551_v31  ;;  %vm152_vm4 = vcmask 1041409   ;;  %vm154_vm5 = vcmask 261120   ;;  %vm233_vm6 = vcmask 1041408  }
  0x3b   :  { %71 = vadd.xlane.f32.xlu0 %v70_v7  ;;  %v73_v11 = vadd.f32 %v630_v9, %v628_v8  ;;  %v642_v15 = vld [vmem:[#allocation2 + $0x28] sm:$0xff]  ;;  %v88_v16 = vadd.f32 %v638_v13, %v636_v12  ;;  %v648_v18 = vld [vmem:[#allocation2 + $0x70] sm:$0xff]  ;;  %v650_v19 = vld [vmem:[#allocation2 + $0x78] sm:$0xff]  ;;  %v112_v36 = vadd.s32 4294967288, %v107_v33  ;;  %v119_v37 = vadd.s32 4294967280, %v107_v33  ;;  %s552_s2 = smov [#allocation8]  }
  0x3c   :  { %v76_v17 = vadd.f32 %v642_v15, %v640_v14  ;;  %v652_v20 = vld [vmem:[#allocation2 + $0x30] sm:$0xff]  ;;  %v654_v21 = vld [vmem:[#allocation2 + $0x38] sm:$0xff]  ;;  %v91_v22 = vadd.f32 %v650_v19, %v648_v18  ;;  %v94_v24 = vld [vmem:[#allocation5] sm:$0xff]  ;;  %v126_v42 = vadd.s32 4294967272, %v107_v33  ;;  %v110_v44 = vsub.s32 %v107_v33, %v109_v38  ;;  %s388_s23 = sshll.u32 %s552_s2, 4  ;;  %s389_s23 = int_to_ptr.vmem [resolvable:$true] %s388_s23 }
  0x3d   :  { %v79_v23 = vadd.f32 %v654_v21, %v652_v20  ;;  %v95_v25 = vld [vmem:[#allocation5 + $0x8] sm:$0xff]  ;;  %v96_v28 = vld [vmem:[#allocation5 + $0x10] sm:$0xff]  ;;  %v97_v29 = vld [vmem:[#allocation5 + $0x18] sm:$0xff]  ;;  %v115_v40 = vsub.s32 %v112_v36, %v109_v38  ;;  %v122_v43 = vsub.s32 %v119_v37, %v109_v38  ;;  %vm229_vm7 = vcmask 15360   ;;  %s514_s24 = scalar_lea.vmem %s389_s23, 2048  ;;  %p519_p11 = scmp.lt.s32.totalorder %s389_s23, %s389_s23 }
  0x3e   :  { %86 = vadd.xlane.f32.xlu1 %v85_v10  ;;  %v428_v26 = vpack.c.bf16 %v95_v25, %v94_v24  ;;  %v431_v30 = vpack.c.bf16 %v97_v29, %v96_v28  ;;  %v129_v48 = vsub.s32 %v126_v42, %v109_v38  ;;  %v228_v7 = vld [vmem:[#allocation7] sm:$0x3]  ;;  %p515_p10 = scmp.ne.s32.totalorder %s389_s23, %s514_s24  ;;  %p520_p12 = scmp.lt.s32.totalorder %s514_s24, %s514_s24 }
  0x3f   :  { %74 = vadd.xlane.f32.xlu0 %v73_v11  ;;  %423 = vmatpush3.msk.msra.mxu1 %vm233_vm6, %v228_v7 }
  0x40   :  { %429 = vmatpush3.bf16.msra.mxu0 %v428_v26  ;;  %p521_p13 = por %p520_p12, %p519_p11 }
  0x41   :  { %430 = vmatprep.subr.bf16.mxu0 %v549_v27  ;;  %v315_v27 = vsub.s32 0, %v109_v38 }
  0x42   :  { %89 = vadd.xlane.f32.xlu1 %v88_v16  ;;  %p522_p0 = pnand %p521_p13, %p515_p10 }
  0x43   :  { %77 = vadd.xlane.f32.xlu0 %v76_v17 }
  0x44   :  { %432 = vmatpush3.bf16.msra.mxu0 %v431_v30  ;;  %v334_v30 = vsub.s32 1, %v109_v38 }
  0x46   :  { %92 = vadd.xlane.f32.xlu1 %v91_v22 }
  0x47   :  { %80 = vadd.xlane.f32.xlu0 %v79_v23 }
  0xc7   :  { %v84_v34 = vpop.xlane.xlu1 %83 }
  0xc8   :  { %v72_v35 = vpop.xlane.xlu0 %71  ;;  %v136_v51 = vrot.slane %v84_v34, %v110_v44 }
  0xc9   :  { %v111_v53 = vrot.slane %v72_v35, %v110_v44 }
  0xcb   :  { %v87_v39 = vpop.xlane.xlu1 %86 }
  0xcc   :  { %v75_v41 = vpop.xlane.xlu0 %74  ;;  %v140_v46 = vrot.slane %v87_v39, %v115_v40 }
  0xcd   :  { %v116_v49 = vrot.slane %v75_v41, %v115_v40 }
  0xce   :  { %v141_v55 = vsel %vm117_vm1, %v140_v46, %v136_v51 }
  0xcf   :  { %v90_v45 = vpop.xlane.xlu1 %89  ;;  %v118_v58 = vsel %vm117_vm1, %v116_v49, %v111_v53 }
  0xd0   :  { %v78_v47 = vpop.xlane.xlu0 %77  ;;  %v145_v50 = vrot.slane %v90_v45, %v122_v43 }
  0xd1   :  { %v123_v52 = vrot.slane %v78_v47, %v122_v43 }
  0xd2   :  { %v146_v59 = vsel %vm124_vm2, %v145_v50, %v141_v55 }
  0xd3   :  { %v93_v54 = vpop.xlane.xlu1 %92  ;;  %v125_v61 = vsel %vm124_vm2, %v123_v52, %v118_v58 }
  0xd4   :  { %v150_v56 = vrot.slane %v93_v54, %v129_v48  ;;  %v81_v57 = vpop.xlane.xlu0 %80 }
  0xd5   :  { %v130_v60 = vrot.slane %v81_v57, %v129_v48 }
  0xd6   :  { %v151_v62 = vsel %vm131_vm3, %v150_v56, %v146_v59 }
  0xd7   :  { %v132_v63 = vsel %vm131_vm3, %v130_v60, %v125_v61 }
  0xd8   :  { %v153_v3 = vsel %vm152_vm4, %v151_v62, %v132_v63 }
  0xd9   :  { %420 = vmatmul.mubr.msk.f32.vlgmr.msra.gmra.mrb[0].mxu0 %vm154_vm5, %v153_v3 }
 0x1ac   :  { %v223_v10 = vpop.f32.mrb[0].mxu0 }
 0x1ad   :  { %v227_v11 = vmax.f32 %v223_v10, 0.0  ;;  %v421_v16 = vpop.f32.mrb[1].mxu0 }
 0x1af   :  { %425 = vmatmul.mubr.msk.f32.vlgmr.msra.gmra.mrb[0].mxu1 %vm229_vm7, %v227_v11 }
 0x282   :  { %v303_v17 = vpop.f32.mrb[0].mxu1 }
 0x283   :  { %v307_v22 = vsub.f32 0.0, %v303_v17  ;;  %v426_v23 = vpop.f32.mrb[1].mxu1 }
 0x285   :  { %v308_v24 = vmul.f32 1.442695, %v307_v22 }
 0x287   :  { %444 = vpow2.f32 %v308_v24 }
 0x291   :  { %v445_v25 = vpop.eup %444 }
 0x292   :  { %v310_v26 = vadd.f32 1.0, %v445_v25 }
 0x294   :  { %446 = vrcp.f32 %v310_v26 }
 0x29e   :  { %v447_v28 = vpop.eup %446 }
 0x29f   :  { %v316_v29 = vrot.slane %v447_v28, %v315_v27  ;;  %v335_v31 = vrot.slane %v447_v28, %v334_v30 }
 0x2a1   :  { %322 = vbcast.lane.b32.xlu1 %v316_v29, 264  ;;  %318 = vbcast.lane.b32.xlu0 %v316_v29, 256 }
 0x2a5   :  { %326 = vbcast.lane.b32.xlu1 %v316_v29, 272  ;;  %337 = vbcast.lane.b32.xlu0 %v335_v31, 256 }
 0x2a9   :  { %330 = vbcast.lane.b32.xlu1 %v316_v29, 280  ;;  %345 = vbcast.lane.b32.xlu0 %v335_v31, 272 }
 0x2ad   :  { %341 = vbcast.lane.b32.xlu1 %v335_v31, 264 }
 0x2b1   :  { %349 = vbcast.lane.b32.xlu1 %v335_v31, 280 }
 0x313   :  { %v323_v32 = vpop.permute.xlu1 %322  ;;  %v319_v33 = vpop.permute.xlu0 %318 }
 0x314   :  { %v353_v34 = vmul.f32 %v323_v32, %v628_v8  ;;  %v354_v35 = vmul.f32 %v323_v32, %v630_v9  ;;  %v351_v36 = vmul.f32 %v319_v33, %v616_v2  ;;  %v352_v37 = vmul.f32 %v319_v33, %v620_v4 }
 0x316   :  { %369 = vst [vmem:[#allocation8 + $0x10] sm:$0xff] %v353_v34  ;;  %370 = vst [vmem:[#allocation8 + $0x18] sm:$0xff] %v354_v35 }
 0x317   :  { %367 = vst [vmem:[#allocation8] sm:$0xff] %v351_v36  ;;  %368 = vst [vmem:[#allocation8 + $0x8] sm:$0xff] %v352_v37  ;;  %v327_v38 = vpop.permute.xlu1 %326  ;;  %v338_v39 = vpop.permute.xlu0 %337 }
 0x318   :  { %v355_v40 = vmul.f32 %v327_v38, %v640_v14  ;;  %v356_v41 = vmul.f32 %v327_v38, %v642_v15  ;;  %v359_v42 = vmul.f32 %v338_v39, %v612_v0  ;;  %v360_v8 = vmul.f32 %v338_v39, %v614_v1 }
 0x31a   :  { %371 = vst [vmem:[#allocation8 + $0x20] sm:$0xff] %v355_v40  ;;  %372 = vst [vmem:[#allocation8 + $0x28] sm:$0xff] %v356_v41 }
 0x31b   :  { %375 = vst [vmem:[#allocation8 + $0x40] sm:$0xff] %v359_v42  ;;  %376 = vst [vmem:[#allocation8 + $0x48] sm:$0xff] %v360_v8  ;;  %v331_v2 = vpop.permute.xlu1 %330  ;;  %v346_v4 = vpop.permute.xlu0 %345 }
 0x31c   :  { %v357_v9 = vmul.f32 %v331_v2, %v652_v20  ;;  %v358_v43 = vmul.f32 %v331_v2, %v654_v21  ;;  %v363_v44 = vmul.f32 %v346_v4, %v636_v12  ;;  %v364_v14 = vmul.f32 %v346_v4, %v638_v13 }
 0x31e   :  { %373 = vst [vmem:[#allocation8 + $0x30] sm:$0xff] %v357_v9  ;;  %374 = vst [vmem:[#allocation8 + $0x38] sm:$0xff] %v358_v43 }
 0x31f   :  { %379 = vst [vmem:[#allocation8 + $0x60] sm:$0xff] %v363_v44  ;;  %380 = vst [vmem:[#allocation8 + $0x68] sm:$0xff] %v364_v14  ;;  %v342_v0 = vpop.permute.xlu1 %341 }
 0x320   :  { %v361_v1 = vmul.f32 %v342_v0, %v622_v5  ;;  %v362_v15 = vmul.f32 %v342_v0, %v624_v6 }
 0x322   :  { %377 = vst [vmem:[#allocation8 + $0x50] sm:$0xff] %v361_v1  ;;  %378 = vst [vmem:[#allocation8 + $0x58] sm:$0xff] %v362_v15 }
 0x323   :  { %v350_v20 = vpop.permute.xlu1 %349 }
 0x324   :  { %v365_v21 = vmul.f32 %v350_v20, %v648_v18  ;;  %v366_v12 = vmul.f32 %v350_v20, %v650_v19 }
 0x326   :  { %381 = vst [vmem:[#allocation8 + $0x70] sm:$0xff] %v365_v21  ;;  %382 = vst [vmem:[#allocation8 + $0x78] sm:$0xff] %v366_v12 }
 0x327   :  { %525 = shalt.err (!%p522_p0)
}
 0x328   :  { %s526_s27 = scalar_lea.hbm %s694_s3, 2048 }
 0x329   :  { %p527_p1 = scmp.ne.s32.totalorder %s694_s3, %s526_s27  ;;  %p530_p2 = scmp.lt.u32.totalorder %s526_s27, %s694_s3 }
 0x32b   :  { %p532_p3 = pnand %p530_p2, %p527_p1 }
 0x32d   :  { %535 = shalt.err (!%p532_p3)
}
 0x32e   :  { %394 = dma.vmem_to_hbm [thread:$0]  %s389_s23, 2048, %s694_s3, [#allocation4], %s546_s1, %s546_s1, %s547_s9  }
 0x32f   :  { %540 = dma.done.wait [#allocation4], 2048  }
 0x330   :  { %541 = vsyncadd [#allocation4], 4294965248 }
 0x331   :  { %398 = vsyncpa [#allocation3], 1 }
 0x332   :  { %399 = vsyncpa [#allocation6], 1 }
 0x333   :  { %400 = vsyncpa [#allocation4], 1 }

</bundles_post_ra>
